<compile_context>
chip_gen: v7x
topology: tpu7x:2x2x1
jax: 0.10.0
libtpu: 0.0.40
codegen_flags: <defaults>
</compile_context>

<pallas_src>
import math

import jax
import jax.numpy as jnp
from jax.experimental import pallas as pl
from jax.experimental.pallas import tpu as pltpu


# ------------------------- config (small synthetic sizes) -------------------------
IN_DIM = 16
ENCODER_HIDDEN = [32, 32]
LATENT_DIM = 32
DECODER_HIDDEN = [32, 32]
BATCH = 8
POS_EMB_STEPS = 100.0

ENC_DIMS = [IN_DIM] + list(ENCODER_HIDDEN) + [LATENT_DIM]
DEC_DIMS = [LATENT_DIM] + list(DECODER_HIDDEN) + [1]
LAYER_DIMS = ([(ENC_DIMS[i], ENC_DIMS[i + 1]) for i in range(len(ENC_DIMS) - 1)]
              + [(DEC_DIMS[i], DEC_DIMS[i + 1]) for i in range(len(DEC_DIMS) - 1)])
N_ENC = len(ENC_DIMS) - 1
N_DEC = len(DEC_DIMS) - 1
N_LAYERS = N_ENC + N_DEC
MAXW = max(max(din, dout) for (din, dout) in LAYER_DIMS)    # padded layer width (32)
FREQ_COL = N_LAYERS          # column in constants pack holding duplicated freqs
PHASE_COL = N_LAYERS + 1     # column holding phase (0.0 sin-half, pi/2 cos-half)
N_CONST_COLS = N_LAYERS + 2

assert LATENT_DIM % 2 == 0, "SinusoidalPosEmb requires an even latent dim"
assert ENC_DIMS[-1] == LATENT_DIM, "pos-emb width must match encoder output width"
assert DEC_DIMS[-1] == 1, "decoder must end in a single energy output"


def _elu(v):
    # ELU(alpha=1): x if x > 0 else exp(x) - 1.
    # No clamp: the exp on the >0 branch is discarded by the where (fp32 forward only).
    return jnp.where(v > 0, v, jnp.exp(v) - 1.0)


# ------------------------------- Pallas kernel ------------------------------------
def simplenet_kernel(x_ref, cond_ref, wp_ref, cp_ref, out_ref):
    # x_ref:   (IN_DIM, TM)            batch-on-lanes input tile
    # cond_ref:(1, TM)                 lane-dense per-row noise-level label
    # wp_ref:  (N_LAYERS, MAXW, MAXW)  zero-padded weights, stored TRANSPOSED (dout, din)
    # cp_ref:  (MAXW, N_LAYERS+2)      bias columns + freq column + phase column
    # out_ref: (1, TM)                 lane-dense energy row

    # ----- encoder: Linear/ELU/.../Linear (no trailing ELU) -----
    h = x_ref[...]                                                # (din, TM)
    for li in range(N_ENC):
        din, dout = LAYER_DIMS[li]
        h = (jnp.dot(wp_ref[li, :dout, :din], h,
                     preferred_element_type=jnp.float32)
             + cp_ref[:dout, li:li + 1])                          # (dout, TM)
        if li != N_ENC - 1:
            h = _elu(h)

    # ----- sinusoidal positional embedding (single sin via packed phase) -----
    # arg[j, b] = steps * label[b] * freq_dup[j];  sin half phase 0, cos half phase pi/2
    arg = (POS_EMB_STEPS * cond_ref[...]) * cp_ref[:LATENT_DIM, FREQ_COL:FREQ_COL + 1]
    h = h + jnp.sin(arg + cp_ref[:LATENT_DIM, PHASE_COL:PHASE_COL + 1])

    # ----- decoder hidden layers: Linear + ELU -----
    for lj in range(N_DEC - 1):
        li = N_ENC + lj
        din, dout = LAYER_DIMS[li]
        h = _elu(jnp.dot(wp_ref[li, :dout, :din], h,
                         preferred_element_type=jnp.float32)
                 + cp_ref[:dout, li:li + 1])

    # ----- final Linear (out_dim == 1) + outer ELU, already lane-dense -----
    li = N_LAYERS - 1
    din, _ = LAYER_DIMS[li]
    e = jnp.dot(wp_ref[li, 0:1, :din], h,
                preferred_element_type=jnp.float32)               # (1, TM)
    e = e + cp_ref[0:1, li:li + 1]
    out_ref[...] = _elu(e)


# ------------------------------- parameter init ------------------------------------
def xavier_uniform(key, fan_in, fan_out):
    bound = math.sqrt(6.0 / (fan_in + fan_out))
    return jax.random.uniform(key, (fan_in, fan_out), jnp.float32, -bound, bound)


def init_mlp_params(key, dims):
    """dims = [d0, d1, ..., dL]; returns list of (W (din,dout), b (1,dout))."""
    params = []
    for i in range(len(dims) - 1):
        key, sub = jax.random.split(key)
        w = xavier_uniform(sub, dims[i], dims[i + 1])
        b = jnp.full((1, dims[i + 1]), 0.01, jnp.float32)   # m.bias.data.fill_(0.01)
        params.append((w, b))
    return params, key


def pack_params(enc_params, dec_params):
    """Pack transposed weights into one blob; biases + pos-emb constants into another."""
    layers = list(enc_params) + list(dec_params)
    assert len(layers) == N_LAYERS
    wpack = jnp.zeros((N_LAYERS, MAXW, MAXW), jnp.float32)
    cpack = jnp.zeros((MAXW, N_CONST_COLS), jnp.float32)
    for i, (w, b) in enumerate(layers):
        din, dout = w.shape
        # store W^T so each layer is (dout,din) @ (din,TM) in the batch-on-lanes layout
        wpack = wpack.at[i, :dout, :din].set(jnp.transpose(w))
        cpack = cpack.at[:dout, i].set(jnp.reshape(b, (-1,)))
    half = LATENT_DIM // 2
    emb_scale = math.log(10000.0) / (half - 1)
    freqs = jnp.exp(jnp.arange(half, dtype=jnp.float32) * -emb_scale)
    cpack = cpack.at[:half, FREQ_COL].set(freqs)
    cpack = cpack.at[half:LATENT_DIM, FREQ_COL].set(freqs)
    # phase: 0 for sin half; pi/2 for cos half (sin(x + pi/2) == cos(x))
    cpack = cpack.at[half:LATENT_DIM, PHASE_COL].set(math.pi / 2.0)
    return wpack, cpack


# ------------------------------- wrapper ------------------------------------------
def _pick_tm(B):
    """Batch lives on the lane axis, so TM must be a multiple of 128.
    Large tiles amortize the ~0.35us per-grid-step overhead; keep >= 2 tiles for
    large batches (v7x has 2 TensorCores); prefer multiples of 256 (v6e/v7x MXU)."""
    LANE = 128
    if B <= LANE:
        return LANE
    half = B // 2
    tm = min(1024, max(LANE, (half // LANE) * LANE))
    if tm >= 256:
        tm = (tm // 256) * 256
    return tm


def simplenet_forward(x, cond_labels, wpack, cpack):
    B = x.shape[0]
    TM = _pick_tm(B)
    n_tiles = pl.cdiv(B, TM)
    Bp = n_tiles * TM

    # batch-on-lanes: x -> (IN_DIM, Bp), labels -> (1, Bp)  (layout plumbing in XLA)
    xin = jnp.transpose(x.astype(jnp.float32))
    cond_row = jnp.reshape(cond_labels.astype(jnp.float32), (1, B))
    if Bp != B:
        xin = jnp.pad(xin, ((0, 0), (0, Bp - B)))
        cond_row = jnp.pad(cond_row, ((0, 0), (0, Bp - B)))

    out_row = pl.pallas_call(
        simplenet_kernel,
        out_shape=jax.ShapeDtypeStruct((1, Bp), jnp.float32),
        grid=(n_tiles,),
        in_specs=[
            pl.BlockSpec((IN_DIM, TM), lambda i: (0, i)),               # x tile (lane-dense)
            pl.BlockSpec((1, TM), lambda i: (0, i)),                    # labels row (lane-dense)
            pl.BlockSpec((N_LAYERS, MAXW, MAXW), lambda i: (0, 0, 0)),  # weights, resident
            pl.BlockSpec((MAXW, N_CONST_COLS), lambda i: (0, 0)),       # biases/consts, resident
        ],
        out_specs=pl.BlockSpec((1, TM), lambda i: (0, i)),              # lane-dense energies
        compiler_params=pltpu.CompilerParams(
            dimension_semantics=("parallel",)),                          # megacore over batch
    )(xin, cond_row, wpack, cpack)

    # back to the module's (B, 1) energy shape
    return jnp.reshape(out_row[0, :B], (B, 1))


# ------------------------------- reference (pure JAX) ------------------------------
def simplenet_ref(x, cond_labels, enc_params, dec_params):
    h = x
    for i, (w, b) in enumerate(enc_params):
        h = h @ w + b
        if i != len(enc_params) - 1:
            h = _elu(h)
    half_dim = LATENT_DIM // 2
    emb_scale = math.log(10000.0) / (half_dim - 1)
    freqs = jnp.exp(jnp.arange(half_dim, dtype=jnp.float32) * -emb_scale)
    arg = (POS_EMB_STEPS * cond_labels)[:, None] * freqs[None, :]
    h = h + jnp.concatenate((jnp.sin(arg), jnp.cos(arg)), axis=-1)
    for i, (w, b) in enumerate(dec_params):
        h = h @ w + b
        if i != len(dec_params) - 1:
            h = _elu(h)
    return _elu(h)


if __name__ == "__main__":
    key = jax.random.PRNGKey(0)

    # deterministic parameter init (xavier_uniform weights, bias = 0.01)
    enc_params, key = init_mlp_params(key, ENC_DIMS)
    dec_params, key = init_mlp_params(key, DEC_DIMS)
    wpack, cpack = pack_params(enc_params, dec_params)   # built once, reused per call

    # inputs: x (B, in_dim); cond labels (B,) — noise-level indices as floats in [0, 1)
    key, kx, kc = jax.random.split(key, 3)
    x = jax.random.normal(kx, (BATCH, IN_DIM), jnp.float32)
    cond_labels = jax.random.uniform(kc, (BATCH,), jnp.float32)

    energy = simplenet_forward(x, cond_labels, wpack, cpack)
    energy = jax.block_until_ready(energy)

    ref = simplenet_ref(x, cond_labels, enc_params, dec_params)
    assert energy.shape == (BATCH, 1)
    assert jnp.allclose(energy, ref, atol=2e-5, rtol=2e-5), (energy, ref)

    print("KERNEL_OK")
</pallas_src>

<mosaic_0001>
module attributes {stable_mosaic.version = 11 : i64} {
  func.func @simplenet_kernel(%arg0: i32, %arg1: memref<16x128xf32, #tpu.memory_space<vmem>>, %arg2: memref<1x128xf32, #tpu.memory_space<vmem>>, %arg3: memref<6x32x32xf32, #tpu.memory_space<vmem>>, %arg4: memref<32x8xf32, #tpu.memory_space<vmem>>, %arg5: memref<1x128xf32, #tpu.memory_space<vmem>>) attributes {dimension_semantics = [#tpu.dimension_semantics<parallel>], iteration_bounds = array<i64: 1>, scalar_prefetch = 0 : i64, scratch_operands = 0 : i64, tpu.core_type = #tpu.core_type<tc>, window_params = [{transform_indices = @transform_0, window_bounds = array<i64: 16, 128>}, {transform_indices = @transform_1, window_bounds = array<i64: 1, 128>}, {pipeline_mode = #tpu.pipeline_mode<synchronous>, transform_indices = @transform_2, window_bounds = array<i64: 6, 32, 32>}, {pipeline_mode = #tpu.pipeline_mode<synchronous>, transform_indices = @transform_3, window_bounds = array<i64: 32, 8>}, {transform_indices = @transform_4, window_bounds = array<i64: 1, 128>}]} {
    %c0 = arith.constant 0 : index
    %c0_0 = arith.constant 0 : index
    %0 = vector.load %arg1[%c0, %c0_0] : memref<16x128xf32, #tpu.memory_space<vmem>>, vector<16x128xf32>
    %c0_1 = arith.constant 0 : index
    %c0_2 = arith.constant 0 : index
    %c0_3 = arith.constant 0 : index
    %1 = vector.load %arg3[%c0_1, %c0_2, %c0_3] : memref<6x32x32xf32, #tpu.memory_space<vmem>>, vector<1x32x16xf32>
    %2 = vector.shape_cast %1 : vector<1x32x16xf32> to vector<32x16xf32>
    %cst = arith.constant dense<0.000000e+00> : vector<32x128xf32>
    %3 = tpu.matmul %2, %0, %cst {dimension_numbers = #tpu.dot_dimension_numbers<[1], [0], [0], [1], [0, 0, 1, 1], [], []>} : vector<32x16xf32>, vector<16x128xf32>, vector<32x128xf32> -> vector<32x128xf32>
    %c0_4 = arith.constant 0 : index
    %c0_5 = arith.constant 0 : index
    %4 = vector.load %arg4[%c0_4, %c0_5] : memref<32x8xf32, #tpu.memory_space<vmem>>, vector<32x1xf32>
    %5 = vector.broadcast %4 : vector<32x1xf32> to vector<32x128xf32>
    %6 = arith.addf %3, %5 : vector<32x128xf32>
    %cst_6 = arith.constant 0.000000e+00 : f32
    %7 = vector.broadcast %cst_6 : f32 to vector<32x128xf32>
    %8 = arith.cmpf ogt, %6, %7 : vector<32x128xf32>
    %9 = math.exp %6 : vector<32x128xf32>
    %cst_7 = arith.constant 1.000000e+00 : f32
    %10 = vector.broadcast %cst_7 : f32 to vector<32x128xf32>
    %11 = arith.subf %9, %10 : vector<32x128xf32>
    %12 = arith.select %8, %6, %11 : vector<32x128xi1>, vector<32x128xf32>
    %c1 = arith.constant 1 : index
    %c0_8 = arith.constant 0 : index
    %c0_9 = arith.constant 0 : index
    %13 = vector.load %arg3[%c1, %c0_8, %c0_9] : memref<6x32x32xf32, #tpu.memory_space<vmem>>, vector<1x32x32xf32>
    %14 = vector.shape_cast %13 : vector<1x32x32xf32> to vector<32x32xf32>
    %cst_10 = arith.constant dense<0.000000e+00> : vector<32x128xf32>
    %15 = tpu.matmul %14, %12, %cst_10 {dimension_numbers = #tpu.dot_dimension_numbers<[1], [0], [0], [1], [0, 0, 1, 1], [], []>} : vector<32x32xf32>, vector<32x128xf32>, vector<32x128xf32> -> vector<32x128xf32>
    %c0_11 = arith.constant 0 : index
    %c1_12 = arith.constant 1 : index
    %16 = vector.load %arg4[%c0_11, %c1_12] : memref<32x8xf32, #tpu.memory_space<vmem>>, vector<32x1xf32>
    %17 = vector.broadcast %16 : vector<32x1xf32> to vector<32x128xf32>
    %18 = arith.addf %15, %17 : vector<32x128xf32>
    %cst_13 = arith.constant 0.000000e+00 : f32
    %19 = vector.broadcast %cst_13 : f32 to vector<32x128xf32>
    %20 = arith.cmpf ogt, %18, %19 : vector<32x128xf32>
    %21 = math.exp %18 : vector<32x128xf32>
    %cst_14 = arith.constant 1.000000e+00 : f32
    %22 = vector.broadcast %cst_14 : f32 to vector<32x128xf32>
    %23 = arith.subf %21, %22 : vector<32x128xf32>
    %24 = arith.select %20, %18, %23 : vector<32x128xi1>, vector<32x128xf32>
    %c2 = arith.constant 2 : index
    %c0_15 = arith.constant 0 : index
    %c0_16 = arith.constant 0 : index
    %25 = vector.load %arg3[%c2, %c0_15, %c0_16] : memref<6x32x32xf32, #tpu.memory_space<vmem>>, vector<1x32x32xf32>
    %26 = vector.shape_cast %25 : vector<1x32x32xf32> to vector<32x32xf32>
    %cst_17 = arith.constant dense<0.000000e+00> : vector<32x128xf32>
    %27 = tpu.matmul %26, %24, %cst_17 {dimension_numbers = #tpu.dot_dimension_numbers<[1], [0], [0], [1], [0, 0, 1, 1], [], []>} : vector<32x32xf32>, vector<32x128xf32>, vector<32x128xf32> -> vector<32x128xf32>
    %c0_18 = arith.constant 0 : index
    %c2_19 = arith.constant 2 : index
    %28 = vector.load %arg4[%c0_18, %c2_19] : memref<32x8xf32, #tpu.memory_space<vmem>>, vector<32x1xf32>
    %29 = vector.broadcast %28 : vector<32x1xf32> to vector<32x128xf32>
    %30 = arith.addf %27, %29 : vector<32x128xf32>
    %c0_20 = arith.constant 0 : index
    %c0_21 = arith.constant 0 : index
    %31 = vector.load %arg2[%c0_20, %c0_21] : memref<1x128xf32, #tpu.memory_space<vmem>>, vector<1x128xf32>
    %cst_22 = arith.constant 1.000000e+02 : f32
    %32 = vector.broadcast %cst_22 : f32 to vector<1x128xf32>
    %33 = arith.mulf %32, %31 : vector<1x128xf32>
    %c0_23 = arith.constant 0 : index
    %c6 = arith.constant 6 : index
    %34 = vector.load %arg4[%c0_23, %c6] : memref<32x8xf32, #tpu.memory_space<vmem>>, vector<32x1xf32>
    %35 = vector.broadcast %33 : vector<1x128xf32> to vector<32x128xf32>
    %36 = vector.broadcast %34 : vector<32x1xf32> to vector<32x128xf32>
    %37 = arith.mulf %35, %36 : vector<32x128xf32>
    %c0_24 = arith.constant 0 : index
    %c7 = arith.constant 7 : index
    %38 = vector.load %arg4[%c0_24, %c7] : memref<32x8xf32, #tpu.memory_space<vmem>>, vector<32x1xf32>
    %39 = vector.broadcast %38 : vector<32x1xf32> to vector<32x128xf32>
    %40 = arith.addf %37, %39 : vector<32x128xf32>
    %41 = math.sin %40 : vector<32x128xf32>
    %42 = arith.addf %30, %41 : vector<32x128xf32>
    %c3 = arith.constant 3 : index
    %c0_25 = arith.constant 0 : index
    %c0_26 = arith.constant 0 : index
    %43 = vector.load %arg3[%c3, %c0_25, %c0_26] : memref<6x32x32xf32, #tpu.memory_space<vmem>>, vector<1x32x32xf32>
    %44 = vector.shape_cast %43 : vector<1x32x32xf32> to vector<32x32xf32>
    %cst_27 = arith.constant dense<0.000000e+00> : vector<32x128xf32>
    %45 = tpu.matmul %44, %42, %cst_27 {dimension_numbers = #tpu.dot_dimension_numbers<[1], [0], [0], [1], [0, 0, 1, 1], [], []>} : vector<32x32xf32>, vector<32x128xf32>, vector<32x128xf32> -> vector<32x128xf32>
    %c0_28 = arith.constant 0 : index
    %c3_29 = arith.constant 3 : index
    %46 = vector.load %arg4[%c0_28, %c3_29] : memref<32x8xf32, #tpu.memory_space<vmem>>, vector<32x1xf32>
    %47 = vector.broadcast %46 : vector<32x1xf32> to vector<32x128xf32>
    %48 = arith.addf %45, %47 : vector<32x128xf32>
    %cst_30 = arith.constant 0.000000e+00 : f32
    %49 = vector.broadcast %cst_30 : f32 to vector<32x128xf32>
    %50 = arith.cmpf ogt, %48, %49 : vector<32x128xf32>
    %51 = math.exp %48 : vector<32x128xf32>
    %cst_31 = arith.constant 1.000000e+00 : f32
    %52 = vector.broadcast %cst_31 : f32 to vector<32x128xf32>
    %53 = arith.subf %51, %52 : vector<32x128xf32>
    %54 = arith.select %50, %48, %53 : vector<32x128xi1>, vector<32x128xf32>
    %c4 = arith.constant 4 : index
    %c0_32 = arith.constant 0 : index
    %c0_33 = arith.constant 0 : index
    %55 = vector.load %arg3[%c4, %c0_32, %c0_33] : memref<6x32x32xf32, #tpu.memory_space<vmem>>, vector<1x32x32xf32>
    %56 = vector.shape_cast %55 : vector<1x32x32xf32> to vector<32x32xf32>
    %cst_34 = arith.constant dense<0.000000e+00> : vector<32x128xf32>
    %57 = tpu.matmul %56, %54, %cst_34 {dimension_numbers = #tpu.dot_dimension_numbers<[1], [0], [0], [1], [0, 0, 1, 1], [], []>} : vector<32x32xf32>, vector<32x128xf32>, vector<32x128xf32> -> vector<32x128xf32>
    %c0_35 = arith.constant 0 : index
    %c4_36 = arith.constant 4 : index
    %58 = vector.load %arg4[%c0_35, %c4_36] : memref<32x8xf32, #tpu.memory_space<vmem>>, vector<32x1xf32>
    %59 = vector.broadcast %58 : vector<32x1xf32> to vector<32x128xf32>
    %60 = arith.addf %57, %59 : vector<32x128xf32>
    %cst_37 = arith.constant 0.000000e+00 : f32
    %61 = vector.broadcast %cst_37 : f32 to vector<32x128xf32>
    %62 = arith.cmpf ogt, %60, %61 : vector<32x128xf32>
    %63 = math.exp %60 : vector<32x128xf32>
    %cst_38 = arith.constant 1.000000e+00 : f32
    %64 = vector.broadcast %cst_38 : f32 to vector<32x128xf32>
    %65 = arith.subf %63, %64 : vector<32x128xf32>
    %66 = arith.select %62, %60, %65 : vector<32x128xi1>, vector<32x128xf32>
    %c5 = arith.constant 5 : index
    %c0_39 = arith.constant 0 : index
    %c0_40 = arith.constant 0 : index
    %67 = vector.load %arg3[%c5, %c0_39, %c0_40] : memref<6x32x32xf32, #tpu.memory_space<vmem>>, vector<1x1x32xf32>
    %68 = vector.shape_cast %67 : vector<1x1x32xf32> to vector<1x32xf32>
    %cst_41 = arith.constant dense<0.000000e+00> : vector<1x128xf32>
    %69 = tpu.matmul %68, %66, %cst_41 {dimension_numbers = #tpu.dot_dimension_numbers<[1], [0], [0], [1], [0, 0, 1, 1], [], []>} : vector<1x32xf32>, vector<32x128xf32>, vector<1x128xf32> -> vector<1x128xf32>
    %c0_42 = arith.constant 0 : index
    %c5_43 = arith.constant 5 : index
    %70 = vector.load %arg4[%c0_42, %c5_43] : memref<32x8xf32, #tpu.memory_space<vmem>>, vector<1x1xf32>
    %71 = vector.broadcast %70 : vector<1x1xf32> to vector<1x128xf32>
    %72 = arith.addf %69, %71 : vector<1x128xf32>
    %cst_44 = arith.constant 0.000000e+00 : f32
    %73 = vector.broadcast %cst_44 : f32 to vector<1x128xf32>
    %74 = arith.cmpf ogt, %72, %73 : vector<1x128xf32>
    %75 = math.exp %72 : vector<1x128xf32>
    %cst_45 = arith.constant 1.000000e+00 : f32
    %76 = vector.broadcast %cst_45 : f32 to vector<1x128xf32>
    %77 = arith.subf %75, %76 : vector<1x128xf32>
    %78 = arith.select %74, %72, %77 : vector<1x128xi1>, vector<1x128xf32>
    %c0_46 = arith.constant 0 : index
    %c0_47 = arith.constant 0 : index
    %79 = vector.load %arg5[%c0_46, %c0_47] : memref<1x128xf32, #tpu.memory_space<vmem>>, vector<1x128xf32>
    tpu.vector_store %arg5[%c0_46, %c0_47], %78 {strides = array<i32>} : memref<1x128xf32, #tpu.memory_space<vmem>>, vector<1x128xf32>,
    return
  }
  func.func @transform_0(%arg0: i32) -> (i32, i32) {
    %c0_i32 = arith.constant 0 : i32
    %c0_i32_0 = arith.constant 0 : i32
    return %c0_i32, %arg0 : i32, i32
  }
  func.func @transform_1(%arg0: i32) -> (i32, i32) {
    %c0_i32 = arith.constant 0 : i32
    %c0_i32_0 = arith.constant 0 : i32
    return %c0_i32, %arg0 : i32, i32
  }
  func.func @transform_2(%arg0: i32) -> (i32, i32, i32) {
    %c0_i32 = arith.constant 0 : i32
    %c0_i32_0 = arith.constant 0 : i32
    %c0_i32_1 = arith.constant 0 : i32
    %c0_i32_2 = arith.constant 0 : i32
    return %c0_i32, %c0_i32_0, %c0_i32_1 : i32, i32, i32
  }
  func.func @transform_3(%arg0: i32) -> (i32, i32) {
    %c0_i32 = arith.constant 0 : i32
    %c0_i32_0 = arith.constant 0 : i32
    %c0_i32_1 = arith.constant 0 : i32
    return %c0_i32, %c0_i32_0 : i32, i32
  }
  func.func @transform_4(%arg0: i32) -> (i32, i32) {
    %c0_i32 = arith.constant 0 : i32
    %c0_i32_0 = arith.constant 0 : i32
    return %c0_i32, %arg0 : i32, i32
  }
}

</mosaic_0001>

<bundles_post_ra>
// kernel: tpu_custom_call.1
= control target key start
LH: loop header
LB: loop body
LE: loop exit
PB: predicated region body
PF: predicated region fallthrough
CT: control target
= control target key end

     0   :  { %9 = vsyncpa [#allocation3], 0  ;;  %s2236_s0 = inlined_call_operand.vmem [shape: f32[16,128], index: 0, kind: input, shape index: {}]   ;;  %s2237_s1 = inlined_call_operand.vmem [shape: f32[1,128], index: 1, kind: input, shape index: {}]   ;;  %s2238_s2 = inlined_call_operand.hbm [shape: f32[6,32,32], index: 2, kind: input, shape index: {}]   ;;  %s2239_s3 = inlined_call_operand.vmem [shape: f32[32,8], index: 3, kind: input, shape index: {}]   ;;  %s2240_s4 = inlined_call_operand.hbm [shape: f32[1,128], index: 4, kind: output, shape index: {}]  }
   0x1   :  { %10 = vsyncpa [#allocation4], 0  ;;  %s1655_s15 = smov [#allocation2]   ;;  %s1607_s19 = scalar_lea.hbm %s2238_s2, 3072 }
   0x2   :  { %s20_s16 = sshll.u32 %s1655_s15, 4  ;;  %p1608_p0 = scmp.ne.s32.totalorder %s2238_s2, %s1607_s19  ;;  %s21_s16 = int_to_ptr.vmem [resolvable:$true] %s20_s16 }
   0x3   :  { %p1611_p1 = scmp.lt.u32.totalorder %s1607_s19, %s2238_s2 }
   0x5   :  { %p1613_p2 = pnand %p1611_p1, %p1608_p0 }
   0x7   :  { %1616 = shalt.err (!%p1613_p2)
}
   0x8   :  { %s1617_s24 = scalar_lea.vmem %s21_s16, 3072  ;;  %p1622_p4 = scmp.lt.s32.totalorder %s21_s16, %s21_s16 }
   0x9   :  { %p1618_p3 = scmp.ne.s32.totalorder %s21_s16, %s1617_s24  ;;  %p1623_p5 = scmp.lt.s32.totalorder %s1617_s24, %s1617_s24 }
   0xb   :  { %p1624_p6 = por %p1623_p5, %p1622_p4 }
   0xd   :  { %p1625_p7 = pnand %p1624_p6, %p1618_p3 }
   0xf   :  { %1628 = shalt.err (!%p1625_p7)
}
  0x10   :  { %s1656_s25 = smov 128   ;;  %s1657_s26 = smov 8  }
  0x11   :  { %26 = dma.hbm_to_vmem [thread:$0]  %s2238_s2, 3072, %s21_s16, [#allocation3], %s1656_s25, %s1656_s25, %s1657_s26  }
  0x12   :  { %1651 = dma.done.wait [#allocation3], 3072  }
  0x13   :  { %1652 = vsyncadd [#allocation3], 4294964224  ;;  %v1658_v0 = vmov 0   ;;  %vm62_vm0 = vcmask 130048   ;;  %v32_v1 = vld [vmem:[%s2236_s0] sm:$0xff]  ;;  %v33_v2 = vld [vmem:[%s2236_s0 + $0x8] sm:$0xff] }
  0x14   :  { %1536 = vset.pattern.permute.xlu0 %v1658_v0  ;;  %1537 = vset.pattern.permute.xlu1 %v1658_v0  ;;  %v34_v3 = vld [vmem:[#allocation2] sm:$0xff]  ;;  %v1457_v4 = vpack.c.bf16 %v33_v2, %v32_v1  ;;  %v1728_v6 = vld [vmem:[%s2239_s3 + $0x10] sm:$0xff]  ;;  %v35_v7 = vld [vmem:[#allocation2 + $0x8] sm:$0xff]  ;;  %vm201_vm1 = vcmask 261120   ;;  %v1659_v13 = vmov 1   ;;  %v1660_v14 = vmov 6  }
  0x15   :  { %1384 = vmatprep.mubr.msk.f32.mxu0 %vm62_vm0, %v34_v3  ;;  %v1723_v5 = vld [vmem:[%s2239_s3] sm:$0xff]  ;;  %54 = vperm.xlu1 %1537, %v1728_v6   ;;  %v1735_v8 = vld [vmem:[%s2239_s3 + $0x8] sm:$0xff]  ;;  %v36_v9 = vld [vmem:[#allocation2 + $0x10] sm:$0xff]  ;;  %v1661_v15 = vmov 7   ;;  %v1662_v50 = vmov 2  }
  0x16   :  { %1458 = vmatprep.subr.bf16.mxu0 %v1457_v4  ;;  %44 = vperm.xlu0 %1536, %v1723_v5   ;;  %v1740_v10 = vld [vmem:[%s2239_s3 + $0x18] sm:$0xff]  ;;  %v181_v12 = vld [vmem:[#allocation2 + $0x20] sm:$0xff]  ;;  %v182_v46 = vld [vmem:[#allocation2 + $0x28] sm:$0xff] }
  0x17   :  { %1460 = vmatpush3.bf16.msra.mxu0 %v1457_v4  ;;  %v37_v11 = vld [vmem:[#allocation2 + $0x18] sm:$0xff]  ;;  %1398 = vmatprep.mubr.msk.f32.mxu1 %vm201_vm1, %v181_v12  ;;  %v183_v47 = vld [vmem:[#allocation2 + $0x30] sm:$0xff]  ;;  %v320_v49 = vld [vmem:[#allocation2 + $0x40] sm:$0xff] }
  0x18   :  { %v184_v48 = vld [vmem:[#allocation2 + $0x38] sm:$0xff] }
  0x19   :  { %59 = vperm.xlu1 %1537, %v1740_v10  }
  0x1a   :  { %1385 = vmatmul.mubr.msk.f32.vlgmr.msra.gmra.mrb[0].mxu0 %vm62_vm0, %v35_v7  ;;  %49 = vperm.xlu0 %1536, %v1735_v8  }
  0x1b   :  { %1387 = vmatprep.mubr.msk.f32.mxu0 %vm62_vm0, %v36_v9 }
  0x1d   :  { %1539 = vset.pattern.permute.xlu1 %v1659_v13 }
  0x1e   :  { %1388 = vmatmul.mubr.msk.f32.gmra.mrb[2].mxu0 %vm62_vm0, %v37_v11  ;;  %1538 = vset.pattern.permute.xlu0 %v1659_v13 }
  0x1f   :  { %190 = vperm.xlu1 %1539, %v1735_v8   ;;  %186 = vperm.xlu0 %1538, %v1723_v5  }
  0x20   :  { %1412 = vmatprep.mubr.msk.f32.mxu0 %vm201_vm1, %v320_v49 }
  0x23   :  { %194 = vperm.xlu1 %1539, %v1728_v6   ;;  %198 = vperm.xlu0 %1538, %v1740_v10  }
  0x27   :  { %1540 = vset.pattern.permute.xlu1 %v1660_v14  ;;  %1541 = vset.pattern.permute.xlu0 %v1660_v14 }
  0x28   :  { %446 = vperm.xlu1 %1540, %v1723_v5   ;;  %450 = vperm.xlu0 %1541, %v1735_v8  }
  0x2c   :  { %1542 = vset.pattern.permute.xlu1 %v1661_v15  ;;  %454 = vperm.xlu0 %1541, %v1728_v6  }
  0x2d   :  { %466 = vperm.xlu1 %1542, %v1723_v5  }
  0x30   :  { %1544 = vset.pattern.permute.xlu0 %v1661_v15 }
  0x31   :  { %470 = vperm.xlu1 %1542, %v1735_v8   ;;  %474 = vperm.xlu0 %1544, %v1728_v6  }
  0x35   :  { %1543 = vset.pattern.permute.xlu1 %v1660_v14  ;;  %1547 = vset.pattern.permute.xlu0 %v1662_v50 }
  0x36   :  { %458 = vperm.xlu1 %1543, %v1740_v10   ;;  %329 = vperm.xlu0 %1547, %v1735_v8  }
  0x3a   :  { %1545 = vset.pattern.permute.xlu1 %v1661_v15 }
  0x3b   :  { %478 = vperm.xlu1 %1545, %v1740_v10  }
  0x3f   :  { %1546 = vset.pattern.permute.xlu1 %v1662_v50 }
  0x40   :  { %325 = vperm.xlu1 %1546, %v1723_v5  }
  0x44   :  { %333 = vperm.xlu1 %1546, %v1728_v6  }
  0x48   :  { %337 = vperm.xlu1 %1546, %v1740_v10  }
  0x94   :  { %v55_v17 = vpop.permute.xlu1 %54 }
  0x95   :  { %v45_v16 = vpop.permute.xlu0 %44 }
  0x98   :  { %v60_v24 = vpop.permute.xlu1 %59 }
  0x99   :  { %v50_v18 = vpop.permute.xlu0 %49 }
  0x9e   :  { %v187_v51 = vpop.permute.xlu0 %186  ;;  %v191_v52 = vpop.permute.xlu1 %190 }
  0xa2   :  { %v199_v58 = vpop.permute.xlu0 %198  ;;  %v195_v61 = vpop.permute.xlu1 %194 }
  0xed   :  { %v1386_v19 = vpop.f32.mrb[0].mxu0 }
  0xee   :  { %v147_v20 = vadd.f32 %v1386_v19, %v50_v18  ;;  %v141_v21 = vpop.f32.mrb[1].mxu0 }
  0xef   :  { %v142_v22 = vadd.f32 %v141_v21, %v45_v16  ;;  %v321_v21 = vld [vmem:[#allocation2 + $0x48] sm:$0xff] }
  0xf0   :  { %v166_v23 = vmul.f32 1.442695, %v147_v20  ;;  %vm161_vm2 = vcmp.gt.f32.partialorder %v147_v20, 0.0 }
  0xf1   :  { %v164_v25 = vmul.f32 1.442695, %v142_v22  ;;  %v1389_v26 = vpop.f32.mrb[2].mxu0  ;;  %vm160_vm3 = vcmp.gt.f32.partialorder %v142_v22, 0.0 }
  0xf2   :  { %1553 = vpow2.f32 %v166_v23  ;;  %v157_v27 = vadd.f32 %v1389_v26, %v60_v24  ;;  %v151_v28 = vpop.f32.mrb[3].mxu0  ;;  %v323_v23 = vld [vmem:[#allocation2 + $0x58] sm:$0xff]  ;;  %v440_v24 = vlaneseq  ;;  %v437_v26 = vld [vmem:[%s2237_s1] sm:$0x1] }
  0xf3   :  { %1555 = vpow2.f32 %v164_v25  ;;  %v152_v29 = vadd.f32 %v151_v28, %v55_v17 }
  0xf4   :  { %v170_v30 = vmul.f32 1.442695, %v157_v27  ;;  %vm163_vm4 = vcmp.gt.f32.partialorder %v157_v27, 0.0  ;;  %v441_v25 = vshrl.u32 %v440_v24, 7 }
  0xf5   :  { %v168_v31 = vmul.f32 1.442695, %v152_v29  ;;  %vm162_vm5 = vcmp.gt.f32.partialorder %v152_v29, 0.0 }
  0xf6   :  { %1557 = vpow2.f32 %v170_v30  ;;  %v442_v28 = vsub.s32 0, %v441_v25 }
  0xf7   :  { %1559 = vpow2.f32 %v168_v31 }
  0xfc   :  { %v1554_v32 = vpop.eup %1553 }
  0xfd   :  { %v1556_v33 = vpop.eup %1555  ;;  %v1288_v34 = vadd.f32 -1.0, %v1554_v32 }
  0xfe   :  { %v1287_v35 = vadd.f32 -1.0, %v1556_v33 }
  0xff   :  { %v177_v36 = vsel %vm161_vm2, %v147_v20, %v1288_v34 }
 0x100   :  { %v1558_v37 = vpop.eup %1557  ;;  %v176_v38 = vsel %vm160_vm3, %v142_v22, %v1287_v35  ;;  %v322_v22 = vld [vmem:[#allocation2 + $0x50] sm:$0xff]  ;;  %v451_v35 = vpop.permute.xlu0 %450 }
 0x101   :  { %v1560_v39 = vpop.eup %1559  ;;  %v1290_v40 = vadd.f32 -1.0, %v1558_v37  ;;  %v1461_v41 = vpack.c.bf16 %v177_v36, %v176_v38 }
 0x102   :  { %v1289_v42 = vadd.f32 -1.0, %v1560_v39 }
 0x103   :  { %1462 = vmatprep.subr.bf16.mxu1 %v1461_v41  ;;  %v179_v43 = vsel %vm163_vm4, %v157_v27, %v1290_v40  ;;  %v438_v27 = vmul.f32 100.0, %v437_v26 }
 0x104   :  { %1464 = vmatpush3.bf16.msra.mxu1 %v1461_v41  ;;  %v178_v44 = vsel %vm162_vm5, %v152_v29, %v1289_v42  ;;  %v447_v29 = vpop.permute.xlu1 %446  ;;  %v455_v39 = vpop.permute.xlu0 %454 }
 0x105   :  { %v1465_v45 = vpack.c.bf16 %v179_v43, %v178_v44  ;;  %v443_v30 = vrot.slane %v438_v27, %v442_v28 }
 0x107   :  { %1466 = vmatprep.subr.bf16.mxu1 %v1465_v45  ;;  %v461_v31 = vmul.f32 %v447_v29, %v443_v30  ;;  %v462_v37 = vmul.f32 %v451_v35, %v443_v30 }
 0x108   :  { %1468 = vmatpush3.bf16.msra.mxu1 %v1465_v45  ;;  %v467_v32 = vpop.permute.xlu1 %466  ;;  %v463_v45 = vmul.f32 %v455_v39, %v443_v30 }
 0x109   :  { %v1774_v33 = vadd.f32 %v467_v32, %v461_v31 }
 0x10b   :  { %1399 = vmatmul.mubr.msk.f32.vlgmr.msra.gmra.mrb[0].mxu1 %vm201_vm1, %v182_v46  ;;  %v488_v34 = vand.u32 2139095040, %v1774_v33  ;;  %v475_v46 = vpop.permute.xlu0 %474 }
 0x10c   :  { %1401 = vmatprep.mubr.msk.f32.mxu1 %vm201_vm1, %v183_v47  ;;  %v471_v38 = vpop.permute.xlu1 %470  ;;  %v1780_v49 = vadd.f32 %v475_v46, %v463_v45 }
 0x10d   :  { %v489_v36 = vshrl.u32 %v488_v34, 23  ;;  %v1777_v41 = vadd.f32 %v471_v38, %v462_v37 }
 0x10f   :  { %1402 = vmatmul.mubr.msk.f32.gmra.mrb[2].mxu1 %vm201_vm1, %v184_v48  ;;  %v1303_v40 = vadd.s32 4294967169, %v489_v36  ;;  %v592_v44 = vand.u32 2139095040, %v1777_v41 }
 0x110   :  { %v459_v42 = vpop.permute.xlu1 %458 }
 0x111   :  { %v495_v43 = vadd.s32 1, %v1303_v40  ;;  %v593_v47 = vshrl.u32 %v592_v44, 23  ;;  %v464_v48 = vmul.f32 %v459_v42, %v443_v30 }
 0x113   :  { %vm496_vm10 = vcmp.gt.s32.totalorder %v495_v43, 0 }
 0x114   :  { %v479_v50 = vpop.permute.xlu1 %478 }
 0x1de   :  { %v1400_v53 = vpop.f32.mrb[0].mxu1 }
 0x1df   :  { %v286_v54 = vadd.f32 %v1400_v53, %v191_v52  ;;  %v280_v55 = vpop.f32.mrb[1].mxu1  ;;  %v1307_v52 = vadd.s32 4294967169, %v593_v47  ;;  %v696_v53 = vand.u32 2139095040, %v1780_v49 }
 0x1e0   :  { %v281_v56 = vadd.f32 %v280_v55, %v187_v51  ;;  %v497_v51 = vsel %vm496_vm10, %v495_v43, 0 }
 0x1e1   :  { %v305_v57 = vmul.f32 1.442695, %v286_v54  ;;  %vm300_vm6 = vcmp.gt.f32.partialorder %v286_v54, 0.0  ;;  %v499_v55 = vand.u32 31, %v497_v51 }
 0x1e2   :  { %v303_v59 = vmul.f32 1.442695, %v281_v56  ;;  %v1403_v60 = vpop.f32.mrb[2].mxu1  ;;  %vm299_vm7 = vcmp.gt.f32.partialorder %v281_v56, 0.0 }
 0x1e3   :  { %1561 = vpow2.f32 %v305_v57  ;;  %v296_v62 = vadd.f32 %v1403_v60, %v199_v58  ;;  %v290_v63 = vpop.f32.mrb[3].mxu1  ;;  %v697_v57 = vshrl.u32 %v696_v53, 23  ;;  %v1787_v60 = vsub.s32 32, %v499_v55 }
 0x1e4   :  { %1563 = vpow2.f32 %v303_v59  ;;  %v291_v0 = vadd.f32 %v290_v63, %v195_v61  ;;  %v2244_v59 = vand.u32 2147483647, %v1774_v33  ;;  %v2243_v63 = vand.u32 2147483647, %v1777_v41 }
 0x1e5   :  { %v309_v1 = vmul.f32 1.442695, %v296_v62  ;;  %vm302_vm8 = vcmp.gt.f32.partialorder %v296_v62, 0.0  ;;  %v1311_v61 = vadd.s32 4294967169, %v697_v57 }
 0x1e6   :  { %v307_v2 = vmul.f32 1.442695, %v291_v0  ;;  %vm301_vm9 = vcmp.gt.f32.partialorder %v291_v0, 0.0  ;;  %v596_v29 = vand.u32 8388607, %v2243_v63 }
 0x1e7   :  { %1565 = vpow2.f32 %v309_v1  ;;  %v1663_v1 = vmov 2102212464  }
 0x1e8   :  { %1567 = vpow2.f32 %v307_v2  ;;  %v511_v2 = vshll.u32 %v1663_v1, %v499_v55  ;;  %v509_v25 = vshrl.u32 %v1663_v1, %v1787_v60  ;;  %v597_v40 = vor.u32 8388608, %v596_v29 }
 0x1ed   :  { %v1562_v3 = vpop.eup %1561 }
 0x1ee   :  { %v1564_v4 = vpop.eup %1563  ;;  %v1296_v7 = vadd.f32 -1.0, %v1562_v3  ;;  %v1664_v3 = vmov 920167782  }
 0x1ef   :  { %v1295_v9 = vadd.f32 -1.0, %v1564_v4  ;;  %v512_v4 = vshrl.u32 %v1664_v3, %v1787_v60 }
 0x1f0   :  { %v316_v11 = vsel %vm300_vm6, %v286_v54, %v1296_v7  ;;  %v1783_v54 = vadd.f32 %v479_v50, %v464_v48  ;;  %v2242_v7 = vand.u32 2147483647, %v1780_v49 }
 0x1f1   :  { %v1566_v12 = vpop.eup %1565  ;;  %v315_v13 = vsel %vm299_vm7, %v281_v56, %v1295_v9  ;;  %v599_v56 = vadd.s32 1, %v1307_v52  ;;  %v1796_v9 = vshrl.u32 %v497_v51, 5  ;;  %v513_v26 = vor.u32 %v512_v4, %v511_v2 }
 0x1f2   :  { %v1568_v14 = vpop.eup %1567  ;;  %v1298_v15 = vadd.f32 -1.0, %v1566_v12  ;;  %v1469_v16 = vpack.c.bf16 %v316_v11, %v315_v13  ;;  %v800_v58 = vand.u32 2139095040, %v1783_v54  ;;  %v514_v11 = vshll.u32 %v1664_v3, %v499_v55 }
 0x1f3   :  { %v1297_v17 = vadd.f32 -1.0, %v1568_v14  ;;  %vm600_vm11 = vcmp.gt.s32.totalorder %v599_v56, 0  ;;  %v1665_v12 = vmov 1326507024   ;;  %vm520_vm12 = vcmp.lt.s32.totalorder %v1796_v9, 4 }
 0x1f4   :  { %1470 = vmatprep.subr.bf16.mxu0 %v1469_v16  ;;  %v318_v18 = vsel %vm302_vm8, %v296_v62, %v1298_v15  ;;  %v801_v62 = vshrl.u32 %v800_v58, 23  ;;  %v515_v13 = vshrl.u32 %v1665_v12, %v1787_v60  ;;  %v601_v14 = vsel %vm600_vm11, %v599_v56, 0 }
 0x1f5   :  { %1472 = vmatpush3.bf16.msra.mxu0 %v1469_v16  ;;  %v317_v19 = vsel %vm301_vm9, %v291_v0, %v1297_v17  ;;  %v492_v0 = vand.u32 8388607, %v2244_v59  ;;  %v1666_v15 = vmov 683565275   ;;  %v1667_v17 = vmov 2475754826  }
 0x1f6   :  { %v1473_v20 = vpack.c.bf16 %v318_v18, %v317_v19  ;;  %v502_v16 = vshll.u32 %v1666_v15, %v499_v55  ;;  %v505_v18 = vshll.u32 %v1667_v17, %v499_v55  ;;  %v703_v19 = vadd.s32 1, %v1311_v61 }
 0x1f7   :  { %v603_v27 = vand.u32 31, %v601_v14  ;;  %v516_v28 = vor.u32 %v515_v13, %v514_v11  ;;  %v700_v30 = vand.u32 8388607, %v2242_v7  ;;  %v493_v31 = vor.u32 8388608, %v492_v0 }
 0x1f8   :  { %1474 = vmatprep.subr.bf16.mxu0 %v1473_v20  ;;  %vm704_vm13 = vcmp.gt.s32.totalorder %v703_v19, 0  ;;  %vm517_vm14 = vcmp.lt.s32.totalorder %v1796_v9, 1  ;;  %vm519_vm15 = vcmp.lt.s32.totalorder %v1796_v9, 3  ;;  %v526_v37 = vsel %vm520_vm12, %v513_v26, 920167782 }
 0x1f9   :  { %1476 = vmatpush3.bf16.msra.mxu0 %v1473_v20  ;;  %v1315_v20 = vadd.s32 4294967169, %v801_v62  ;;  %v604_v38 = vsub.s32 32, %v603_v27  ;;  %v530_v39 = vsel %vm520_vm12, %v516_v28, 1326507024  ;;  %v701_v42 = vor.u32 8388608, %v700_v30 }
 0x1fa   :  { %v2241_v43 = vand.u32 2147483647, %v1783_v54  ;;  %vm518_vm0 = vcmp.lt.s32.totalorder %v1796_v9, 2  ;;  %v606_v44 = vshll.u32 %v1666_v15, %v603_v27  ;;  %v609_v45 = vshll.u32 %v1667_v17, %v603_v27 }
 0x1fb   :  { %v807_v32 = vadd.s32 1, %v1315_v20  ;;  %v705_v50 = vsel %vm704_vm13, %v703_v19, 0  ;;  %v531_v51 = vsel %vm519_vm15, %v513_v26, %v530_v39  ;;  %v607_v52 = vshrl.u32 %v1667_v17, %v604_v38 }
 0x1fc   :  { %1413 = vmatmul.mubr.msk.f32.vlgmr.msra.gmra.mrb[4].mxu0 %vm201_vm1, %v321_v21  ;;  %v503_v21 = vshrl.u32 %v1667_v17, %v1787_v60  ;;  %v613_v56 = vshrl.u32 %v1663_v1, %v604_v38  ;;  %v615_v57 = vshll.u32 %v1663_v1, %v603_v27  ;;  %v616_v58 = vshrl.u32 %v1664_v3, %v604_v38 }
 0x1fd   :  { %1415 = vmatprep.mubr.msk.f32.mxu0 %vm201_vm1, %v322_v22  ;;  %v1668_v22 = vmov 2131351028   ;;  %vm808_vm2 = vcmp.gt.s32.totalorder %v807_v32, 0  ;;  %v1847_v62 = vshrl.u32 %v601_v14, 5  ;;  %v618_v0 = vshll.u32 %v1664_v3, %v603_v27 }
 0x1fe   :  { %v508_v24 = vshll.u32 %v1668_v22, %v499_v55  ;;  %v1815_v34 = vor.u32 %v503_v21, %v502_v16  ;;  %v610_v53 = vshrl.u32 %v1668_v22, %v604_v38  ;;  %v612_v55 = vshll.u32 %v1668_v22, %v603_v27 }
 0x1ff   :  { %v809_v61 = vsel %vm808_vm2, %v807_v32, 0  ;;  %v619_v2 = vshrl.u32 %v1665_v12, %v604_v38  ;;  %v707_v4 = vand.u32 31, %v705_v50  ;;  %v1851_v11 = vshll.u32 %v493_v31, 8 }
 0x200   :  { %1416 = vmatmul.mubr.msk.f32.gmra.mrb[6].mxu0 %vm201_vm1, %v323_v23  ;;  %v506_v23 = vshrl.u32 %v1668_v22, %v1787_v60  ;;  %v510_v36 = vor.u32 %v509_v25, %v508_v24  ;;  %v1853_v13 = vshll.u32 %v597_v40, 8  ;;  %v1855_v16 = vshll.u32 %v701_v42, 8 }
 0x201   :  { %v1863_v19 = vshrl.u32 %v1666_v15, %v1787_v60  ;;  %v811_v21 = vand.u32 31, %v809_v61  ;;  %v1875_v24 = vor.u32 %v610_v53, %v609_v45  ;;  %v614_v25 = vor.u32 %v613_v56, %v612_v55 }
 0x202   :  { %v1817_v35 = vor.u32 %v506_v23, %v505_v18  ;;  %v527_v47 = vsel %vm519_vm15, %v510_v36, %v526_v37  ;;  %v1859_v18 = vand.u32 8388607, %v2241_v43  ;;  %v1873_v23 = vor.u32 %v607_v52, %v606_v44 }
 0x203   :  { %v617_v26 = vor.u32 %v616_v58, %v615_v57  ;;  %v620_v27 = vor.u32 %v619_v2, %v618_v0  ;;  %vm621_vm3 = vcmp.lt.s32.totalorder %v1847_v62, 1  ;;  %vm624_vm4 = vcmp.lt.s32.totalorder %v1847_v62, 4 }
 0x204   :  { %v525_v46 = vsel %vm517_vm14, %v1815_v34, %v1817_v35  ;;  %v529_v48 = vsel %vm517_vm14, %v1817_v35, %v510_v36  ;;  %v1879_v60 = vsub.s32 32, %v707_v4  ;;  %v1883_v28 = vsel %vm520_vm12, %v510_v36, 2102212464 }
 0x205   :  { %v1867_v14 = vsel %vm518_vm0, %v525_v46, %v527_v47  ;;  %v1871_v20 = vsel %vm518_vm0, %v529_v48, %v531_v51  ;;  %v1892_v31 = vshrl.u32 %v1666_v15, %v604_v38  ;;  %vm623_vm5 = vcmp.lt.s32.totalorder %v1847_v62, 3 }
 0x206   :  { %v1887_v29 = vmul.u32.u64.low %v1851_v11, %v1871_v20  ;;  %v1888_v30 = vmul.u32.u64.high %v1851_v11, %v1871_v20, %v1887_v29  ;;  %v1896_v32 = vmul.u32.u64.low %v1851_v11, %v1867_v14  ;;  %v1897_v37 = vmul.u32.u64.high %v1851_v11, %v1867_v14, %v1896_v32 }
 0x207   :  { %v1901_v39 = vsub.s32 32, %v811_v21  ;;  %v1903_v36 = vsel %vm624_vm4, %v614_v25, 2102212464  ;;  %v629_v40 = vsel %vm621_vm3, %v1873_v23, %v1875_v24  ;;  %v630_v42 = vsel %vm624_vm4, %v617_v26, 920167782 }
 0x208   :  { %v633_v38 = vsel %vm621_vm3, %v1875_v24, %v614_v25  ;;  %vm622_vm6 = vcmp.lt.s32.totalorder %v1847_v62, 2  ;;  %v634_v44 = vsel %vm624_vm4, %v620_v27, 1326507024  ;;  %v1913_v45 = vshrl.u32 %v705_v50, 5 }
 0x209   :  { %v719_v46 = vshll.u32 %v1663_v1, %v707_v4  ;;  %v720_v47 = vshrl.u32 %v1664_v3, %v1879_v60  ;;  %v710_v48 = vshll.u32 %v1666_v15, %v707_v4  ;;  %v711_v51 = vshrl.u32 %v1667_v17, %v1879_v60 }
 0x20a   :  { %v713_v52 = vshll.u32 %v1667_v17, %v707_v4  ;;  %v716_v53 = vshll.u32 %v1668_v22, %v707_v4  ;;  %v722_v55 = vshll.u32 %v1664_v3, %v707_v4  ;;  %v723_v50 = vshrl.u32 %v1665_v12, %v1879_v60 }
 0x20b   :  { %v823_v56 = vshll.u32 %v1663_v1, %v811_v21  ;;  %v824_v57 = vshrl.u32 %v1664_v3, %v1901_v39  ;;  %v714_v58 = vshrl.u32 %v1668_v22, %v1879_v60  ;;  %v1931_v0 = vshrl.u32 %v809_v61, 5 }
 0x20c   :  { %v826_v2 = vshll.u32 %v1664_v3, %v811_v21  ;;  %v827_v14 = vshrl.u32 %v1665_v12, %v1901_v39  ;;  %v717_v4 = vshrl.u32 %v1663_v1, %v1879_v60  ;;  %v721_v20 = vor.u32 %v720_v47, %v719_v46 }
 0x20d   :  { %v814_v27 = vshll.u32 %v1666_v15, %v811_v21  ;;  %v817_v29 = vshll.u32 %v1667_v17, %v811_v21  ;;  %v815_v43 = vshrl.u32 %v1667_v17, %v1901_v39  ;;  %v818_v61 = vshrl.u32 %v1668_v22, %v1901_v39 }
 0x20e   :  { %v820_v7 = vshll.u32 %v1668_v22, %v811_v21  ;;  %v821_v3 = vshrl.u32 %v1663_v1, %v1901_v39  ;;  %v631_v12 = vsel %vm623_vm5, %v614_v25, %v630_v42  ;;  %v724_v63 = vor.u32 %v723_v50, %v722_v55  ;;  %v906_v50 = vld [vmem:[#allocation2 + $0x60] sm:$0xff] }
 0x20f   :  { %vm728_vm7 = vcmp.lt.s32.totalorder %v1913_v45, 4  ;;  %v825_v46 = vor.u32 %v824_v57, %v823_v56  ;;  %v635_v47 = vsel %vm623_vm5, %v617_v26, %v634_v44  ;;  %vm725_vm8 = vcmp.lt.s32.totalorder %v1913_v45, 1  ;;  %1426 = vmatprep.mubr.msk.f32.mxu1 %vm201_vm1, %v906_v50 }
 0x210   :  { %v828_v17 = vor.u32 %v827_v14, %v826_v2  ;;  %vm832_vm9 = vcmp.lt.s32.totalorder %v1931_v0, 4  ;;  %v1954_v59 = vor.u32 %v711_v51, %v710_v48  ;;  %v1956_v22 = vor.u32 %v714_v58, %v713_v52 }
 0x211   :  { %v718_v1 = vor.u32 %v717_v4, %v716_v53  ;;  %vm727_vm10 = vcmp.lt.s32.totalorder %v1913_v45, 3  ;;  %v734_v21 = vsel %vm728_vm7, %v721_v20, 920167782  ;;  %v1961_v25 = vor.u32 %v815_v43, %v814_v27 }
 0x212   :  { %v1963_v42 = vor.u32 %v818_v61, %v817_v29  ;;  %v822_v26 = vor.u32 %v821_v3, %v820_v7  ;;  %v738_v44 = vsel %vm728_vm7, %v724_v63, 1326507024  ;;  %vm829_vm11 = vcmp.lt.s32.totalorder %v1931_v0, 1 }
 0x213   :  { %vm831_vm12 = vcmp.lt.s32.totalorder %v1931_v0, 3  ;;  %v838_v48 = vsel %vm832_vm9, %v825_v46, 920167782  ;;  %v632_v51 = vsel %vm622_vm6, %v629_v40, %v631_v12  ;;  %v636_v43 = vsel %vm622_vm6, %v633_v38, %v635_v47 }
 0x214   :  { %v805_v52 = vor.u32 8388608, %v1859_v18  ;;  %v842_v7 = vsel %vm832_vm9, %v828_v17, 1326507024  ;;  %vm726_vm13 = vcmp.lt.s32.totalorder %v1913_v45, 2  ;;  %v733_v63 = vsel %vm725_vm8, %v1954_v59, %v1956_v22 }
 0x215   :  { %v735_v53 = vsel %vm727_vm10, %v718_v1, %v734_v21  ;;  %v737_v40 = vsel %vm725_vm8, %v1956_v22, %v718_v1  ;;  %v739_v18 = vsel %vm727_vm10, %v721_v20, %v738_v44  ;;  %vm830_vm2 = vcmp.lt.s32.totalorder %v1931_v0, 2 }
 0x216   :  { %v837_v38 = vsel %vm829_vm11, %v1961_v25, %v1963_v42  ;;  %v839_v55 = vsel %vm831_vm12, %v822_v26, %v838_v48  ;;  %v1998_v56 = vmul.u32.u64.low %v1853_v13, %v632_v51  ;;  %v1999_v57 = vmul.u32.u64.high %v1853_v13, %v632_v51, %v1998_v56 }
 0x217   :  { %v841_v58 = vsel %vm829_vm11, %v1963_v42, %v822_v26  ;;  %v843_v2 = vsel %vm831_vm12, %v825_v46, %v842_v7  ;;  %v2009_v14 = vmul.u32.u64.low %v1853_v13, %v636_v43  ;;  %v2010_v4 = vmul.u32.u64.high %v1853_v13, %v636_v43, %v2009_v14 }
 0x218   :  { %v736_v20 = vsel %vm726_vm13, %v733_v63, %v735_v53  ;;  %v845_v27 = vshll.u32 %v805_v52, 8  ;;  %v521_v29 = vsel %vm517_vm14, %v1863_v19, %v1815_v34  ;;  %v740_v61 = vsel %vm726_vm13, %v737_v40, %v739_v18 }
 0x219   :  { %v840_v3 = vsel %vm830_vm2, %v837_v38, %v839_v55  ;;  %v523_v12 = vsel %vm519_vm15, %v1817_v35, %v1883_v28  ;;  %v625_v46 = vsel %vm621_vm3, %v1892_v31, %v1873_v23  ;;  %v627_v34 = vsel %vm623_vm5, %v1875_v24, %v1903_v36 }
 0x21a   :  { %v844_v19 = vsel %vm830_vm2, %v841_v58, %v843_v2  ;;  %v709_v47 = vshrl.u32 %v1666_v15, %v1879_v60  ;;  %v730_v17 = vsel %vm728_vm7, %v718_v1, 2102212464  ;;  %v813_v36 = vshrl.u32 %v1666_v15, %v1901_v39 }
 0x21b   :  { %v2041_v35 = vmul.u32.u64.low %v1855_v16, %v736_v20  ;;  %v2042_v28 = vmul.u32.u64.high %v1855_v16, %v736_v20, %v2041_v35  ;;  %v2046_v23 = vmul.u32.u64.low %v1855_v16, %v740_v61  ;;  %v2047_v31 = vmul.u32.u64.high %v1855_v16, %v740_v61, %v2046_v23 }
 0x21c   :  { %v2049_v21 = vmul.u32.u64.low %v845_v27, %v840_v3  ;;  %v2050_v24 = vmul.u32.u64.high %v845_v27, %v840_v3, %v2049_v21  ;;  %v2055_v60 = vmul.u32.u64.low %v845_v27, %v844_v19  ;;  %v2056_v44 = vmul.u32.u64.high %v845_v27, %v844_v19, %v2055_v60 }
 0x21d   :  { %v524_v1 = vsel %vm518_vm0, %v521_v29, %v523_v12  ;;  %v543_v48 = vadd.s32 1, %v1897_v37  ;;  %v834_v51 = vsel %vm832_vm9, %v822_v26, 2102212464  ;;  %v1669_v43 = vmov 3  }
 0x21e   :  { %1549 = vset.pattern.permute.xlu1 %v1669_v43  ;;  %1548 = vset.pattern.permute.xlu0 %v1669_v43  ;;  %vm542_vm14 = vc.u32 %v1888_v30, %v1896_v32  ;;  %v628_v15 = vsel %vm622_vm6, %v625_v46, %v627_v34  ;;  %v647_v39 = vadd.s32 1, %v1999_v57  ;;  %vm646_vm15 = vc.u32 %v2010_v4, %v1998_v56 }
 0x21f   :  { %915 = vperm.xlu1 %1549, %v1735_v8   ;;  %911 = vperm.xlu0 %1548, %v1723_v5   ;;  %v729_v9 = vsel %vm725_vm8, %v709_v47, %v1954_v59  ;;  %v731_v26 = vsel %vm727_vm10, %v1956_v22, %v730_v17  ;;  %v540_v62 = vmul.u32 %v1851_v11, %v524_v1  ;;  %v751_v22 = vadd.s32 1, %v2042_v28 }
 0x220   :  { %v833_v52 = vsel %vm829_vm11, %v813_v36, %v1961_v25  ;;  %v835_v5 = vsel %vm831_vm12, %v1963_v42, %v834_v51  ;;  %v544_v8 = vsel %vm542_vm14, %v543_v48, %v1897_v37  ;;  %v644_v7 = vmul.u32 %v1853_v13, %v628_v15 }
 0x221   :  { %v648_v59 = vsel %vm646_vm15, %v647_v39, %v1999_v57  ;;  %v732_v63 = vsel %vm726_vm13, %v729_v9, %v731_v26  ;;  %vm750_vm0 = vc.u32 %v2047_v31, %v2041_v35  ;;  %v836_v11 = vsel %vm830_vm2, %v833_v52, %v835_v5 }
 0x222   :  { %v855_v37 = vadd.s32 1, %v2050_v24  ;;  %v545_v13 = vadd.s32 %v544_v8, %v540_v62  ;;  %vm854_vm3 = vc.u32 %v2056_v44, %v2049_v21  ;;  %v649_v45 = vadd.s32 %v648_v59, %v644_v7 }
 0x223   :  { %919 = vperm.xlu1 %1549, %v1728_v6   ;;  %923 = vperm.xlu0 %1548, %v1740_v10   ;;  %v748_v25 = vmul.u32 %v1855_v16, %v732_v63  ;;  %v752_v42 = vsel %vm750_vm0, %v751_v22, %v2042_v28  ;;  %v852_v6 = vmul.u32 %v845_v27, %v836_v11  ;;  %vm487_vm8 = vcmp.lt.s32.totalorder %v1774_v33, 0 }
 0x224   :  { %v856_v10 = vsel %vm854_vm3, %v855_v37, %v2050_v24  ;;  %v546_v53 = vadd.s32 536870912, %v545_v13  ;;  %v650_v40 = vadd.s32 536870912, %v649_v45  ;;  %v541_v8 = vadd.s32 %v1896_v32, %v1888_v30 }
 0x225   :  { %v753_v18 = vadd.s32 %v752_v42, %v748_v25  ;;  %v857_v38 = vadd.s32 %v856_v10, %v852_v6  ;;  %v645_v22 = vadd.s32 %v1998_v56, %v2010_v4  ;;  %vm591_vm9 = vcmp.lt.s32.totalorder %v1777_v41, 0 }
 0x226   :  { %v2103_v0 = vshrl.u32 %v546_v53, 30  ;;  %v2105_v55 = vshrl.u32 %v650_v40, 30  ;;  %vm695_vm12 = vcmp.lt.s32.totalorder %v1780_v49, 0  ;;  %vm799_vm13 = vcmp.lt.s32.totalorder %v1783_v54, 0 }
 0x227   :  { %v754_v50 = vadd.s32 536870912, %v753_v18  ;;  %v858_v57 = vadd.s32 536870912, %v857_v38 }
 0x228   :  { %v548_v58 = vshll.u32 %v2103_v0, 30  ;;  %v652_v2 = vshll.u32 %v2105_v55, 30 }
 0x229   :  { %v2109_v16 = vshrl.u32 %v754_v50, 30  ;;  %v2111_v14 = vshrl.u32 %v858_v57, 30 }
 0x22a   :  { %v549_v20 = vsub.s32 %v545_v13, %v548_v58  ;;  %v653_v27 = vsub.s32 %v649_v45, %v652_v2 }
 0x22b   :  { %v756_v29 = vshll.u32 %v2109_v16, 30  ;;  %v860_v61 = vshll.u32 %v2111_v14, 30 }
 0x22c   :  { %v551_v3 = vsub.s32 0, %v549_v20  ;;  %v655_v12 = vsub.s32 0, %v653_v27 }
 0x22d   :  { %v757_v46 = vsub.s32 %v753_v18, %v756_v29  ;;  %v861_v34 = vsub.s32 %v857_v38, %v860_v61  ;;  %v749_v18 = vadd.s32 %v2041_v35, %v2047_v31  ;;  %v853_v38 = vadd.s32 %v2049_v21, %v2056_v44 }
 0x22e   :  { %v1304_v19 = vmin.u32 %v551_v3, %v549_v20  ;;  %v1308_v47 = vmin.u32 %v655_v12, %v653_v27 }
 0x22f   :  { %v759_v17 = vsub.s32 0, %v757_v46  ;;  %v863_v28 = vsub.s32 0, %v861_v34 }
 0x230   :  { %v553_v23 = vclz %v1304_v19  ;;  %v657_v24 = vclz %v1308_v47 }
 0x231   :  { %v1312_v36 = vmin.u32 %v759_v17, %v757_v46  ;;  %v1316_v60 = vmin.u32 %v863_v28, %v861_v34 }
 0x232   :  { %v1305_v1 = vadd.s32 4294967294, %v553_v23  ;;  %v1309_v48 = vadd.s32 4294967294, %v657_v24 }
 0x233   :  { %v761_v51 = vclz %v1312_v36  ;;  %v865_v43 = vclz %v1316_v60 }
 0x234   :  { %vm1306_vm4 = vcmp.lt.s32.totalorder %v1305_v1, 0  ;;  %vm1310_vm5 = vcmp.lt.s32.totalorder %v1309_v48, 0 }
 0x235   :  { %v1313_v15 = vadd.s32 4294967294, %v761_v51  ;;  %v1317_v39 = vadd.s32 4294967294, %v865_v43  ;;  %v556_v9 = vsel %vm1306_vm4, 0, %v1305_v1  ;;  %v660_v26 = vsel %vm1310_vm5, 0, %v1309_v48 }
 0x236   :  { %v561_v62 = vsub.s32 4294967266, %v556_v9  ;;  %v665_v52 = vsub.s32 4294967266, %v660_v26  ;;  %v557_v59 = vsub.s32 32, %v556_v9  ;;  %v661_v11 = vsub.s32 32, %v660_v26 }
 0x237   :  { %vm1314_vm6 = vcmp.lt.s32.totalorder %v1313_v15, 0  ;;  %vm1318_vm7 = vcmp.lt.s32.totalorder %v1317_v39, 0  ;;  %v558_v25 = vshll.u32 %v549_v20, %v556_v9  ;;  %v662_v10 = vshll.u32 %v653_v27, %v660_v26 }
 0x238   :  { %v764_v5 = vsel %vm1314_vm6, 0, %v1313_v15  ;;  %v868_v7 = vsel %vm1318_vm7, 0, %v1317_v39  ;;  %v562_v63 = vadd.s32 127, %v561_v62  ;;  %v666_v37 = vadd.s32 127, %v665_v52 }
 0x239   :  { %v769_v13 = vsub.s32 4294967266, %v764_v5  ;;  %v873_v45 = vsub.s32 4294967266, %v868_v7  ;;  %v559_v42 = vshrl.u32 %v541_v8, %v557_v59  ;;  %v663_v53 = vshrl.u32 %v645_v22, %v661_v11 }
 0x23a   :  { %v563_v6 = vshll.u32 %v562_v63, 23  ;;  %v667_v40 = vshll.u32 %v666_v37, 23  ;;  %v765_v30 = vsub.s32 32, %v764_v5  ;;  %v869_v50 = vsub.s32 32, %v868_v7 }
 0x23b   :  { %v770_v32 = vadd.s32 127, %v769_v13  ;;  %v874_v56 = vadd.s32 127, %v873_v45  ;;  %v560_v4 = vor.u32 %v559_v42, %v558_v25  ;;  %v664_v58 = vor.u32 %v663_v53, %v662_v10 }
 0x23c   :  { %v564_v57 = vor.u32 4788187, %v563_v6  ;;  %v668_v2 = vor.u32 4788187, %v667_v40  ;;  %v766_v20 = vshll.u32 %v757_v46, %v764_v5  ;;  %v767_v29 = vshrl.u32 %v749_v18, %v765_v30 }
 0x23d   :  { %v771_v61 = vshll.u32 %v770_v32, 23  ;;  %v870_v27 = vshll.u32 %v861_v34, %v868_v7  ;;  %v871_v3 = vshrl.u32 %v853_v38, %v869_v50  ;;  %v875_v12 = vshll.u32 %v874_v56, 23 }
 0x23e   :  { %v565_v19 = vand.u32 2147483647, %v564_v57  ;;  %v567_v47 = vcvt.s32.f32 %v560_v4  ;;  %v669_v35 = vand.u32 2147483647, %v668_v2  ;;  %v671_v31 = vcvt.s32.f32 %v664_v58 }
 0x23f   :  { %v768_v17 = vor.u32 %v767_v29, %v766_v20  ;;  %v772_v28 = vor.u32 4788187, %v771_v61  ;;  %v872_v23 = vor.u32 %v871_v3, %v870_v27  ;;  %v876_v21 = vor.u32 4788187, %v875_v12 }
 0x240   :  { %v568_v44 = vmul.f32 %v567_v47, %v565_v19  ;;  %v672_v24 = vmul.f32 %v671_v31, %v669_v35  ;;  %v2245_v15 = vand.u32 2147483647, %v1774_v33  ;;  %v2248_v26 = vand.u32 2147483647, %v1777_v41 }
 0x241   :  { %v773_v36 = vand.u32 2147483647, %v772_v28  ;;  %v775_v60 = vcvt.s32.f32 %v768_v17  ;;  %v877_v1 = vand.u32 2147483647, %v876_v21  ;;  %v879_v48 = vcvt.s32.f32 %v872_v23 }
 0x242   :  { %v569_v46 = vxor.u32 2147483648, %v568_v44  ;;  %v673_v34 = vxor.u32 2147483648, %v672_v24  ;;  %vm2127_vm10 = vcmp.le.f32.partialorder %v2245_v15, 0.7853982  ;;  %vm2135_vm11 = vcmp.le.f32.partialorder %v2248_v26, 0.7853982  ;;  %v330_v15 = vpop.permute.xlu0 %329 }
 0x243   :  { %v776_v51 = vmul.f32 %v775_v60, %v773_v36  ;;  %v880_v43 = vmul.f32 %v879_v48, %v877_v1  ;;  %v675_v63 = vsub.s32 4, %v2105_v55  ;;  %v2251_v22 = vand.u32 2147483647, %v1780_v49 }
 0x244   :  { %v570_v9 = vsel %vm487_vm8, %v569_v46, %v568_v44  ;;  %v674_v52 = vsel %vm591_vm9, %v673_v34, %v672_v24  ;;  %v571_v13 = vsub.s32 4, %v2103_v0  ;;  %v2254_v45 = vand.u32 2147483647, %v1783_v54 }
 0x245   :  { %v777_v5 = vxor.u32 2147483648, %v776_v51  ;;  %v881_v8 = vxor.u32 2147483648, %v880_v43  ;;  %v573_v7 = vsel %vm2127_vm10, %v1774_v33, %v570_v9  ;;  %v677_v59 = vsel %vm2135_vm11, %v1777_v41, %v674_v52 }
 0x246   :  { %vm2152_vm2 = vcmp.le.f32.partialorder %v2251_v22, 0.7853982  ;;  %1569 = vcosq.f32 %v573_v7  ;;  %vm2161_vm14 = vcmp.le.f32.partialorder %v2254_v45, 0.7853982  ;;  %v676_v10 = vsel %vm591_vm9, %v675_v63, %v2105_v55 }
 0x247   :  { %v778_v37 = vsel %vm695_vm12, %v777_v5, %v776_v51  ;;  %v882_v42 = vsel %vm799_vm13, %v881_v8, %v880_v43  ;;  %1571 = vcosq.f32 %v677_v59  ;;  %v572_v40 = vsel %vm487_vm8, %v571_v13, %v2103_v0 }
 0x248   :  { %1573 = vsinq.f32 %v677_v59  ;;  %v781_v6 = vsel %vm2152_vm2, %v1780_v49, %v778_v37  ;;  %v885_v53 = vsel %vm2161_vm14, %v1783_v54, %v882_v42  ;;  %v883_v18 = vsub.s32 4, %v2111_v14 }
 0x249   :  { %1575 = vsinq.f32 %v573_v7  ;;  %v779_v30 = vsub.s32 4, %v2109_v16  ;;  %v678_v32 = vsel %vm2135_vm11, 0, %v676_v10  ;;  %v574_v55 = vsel %vm2127_vm10, 0, %v572_v40 }
 0x24a   :  { %1577 = vcosq.f32 %v781_v6  ;;  %v884_v38 = vsel %vm799_vm13, %v883_v18, %v2111_v14  ;;  %v682_v50 = vadd.s32 3, %v678_v32  ;;  %v578_v56 = vadd.s32 3, %v574_v55 }
 0x24b   :  { %1579 = vcosq.f32 %v885_v53  ;;  %v780_v0 = vsel %vm695_vm12, %v779_v30, %v2109_v16  ;;  %v886_v57 = vsel %vm2161_vm14, 0, %v884_v38  ;;  %v326_v16 = vpop.permute.xlu1 %325  ;;  %vm681_vm11 = vweird.f32 %v1777_v41  ;;  %v908_v38 = vld [vmem:[#allocation2 + $0x70] sm:$0xff] }
 0x24c   :  { %1581 = vsinq.f32 %v885_v53  ;;  %v782_v2 = vsel %vm2152_vm2, 0, %v780_v0  ;;  %v683_v29 = vand.u32 3, %v682_v50  ;;  %v579_v27 = vand.u32 3, %v578_v56  ;;  %v1044_v50 = vld [vmem:[#allocation2 + $0x80] sm:$0xff] }
 0x24d   :  { %1583 = vsinq.f32 %v781_v6  ;;  %v890_v14 = vadd.s32 3, %v886_v57  ;;  %v786_v3 = vadd.s32 3, %v782_v2  ;;  %vm577_vm12 = vweird.f32 %v1774_v33  ;;  %1440 = vmatprep.mubr.msk.f32.mxu0 %vm201_vm1, %v1044_v50  ;;  %v1603_v56 = vld [vmem:[%s2239_s3] sm:$0xff]  ;;  %v1605_v57 = vld [vmem:[%s2239_s3 + $0x10] sm:$0xff] }
 0x24e   :  { %vm685_vm15 = vcmp.eq.s32.totalorder %v683_v29, 0  ;;  %vm688_vm0 = vcmp.eq.s32.totalorder %v683_v29, 2  ;;  %vm581_vm3 = vcmp.eq.s32.totalorder %v579_v27, 0  ;;  %vm584_vm4 = vcmp.eq.s32.totalorder %v579_v27, 2 }
 0x24f   :  { %v891_v23 = vand.u32 3, %v890_v14  ;;  %v787_v44 = vand.u32 3, %v786_v3  ;;  %vm684_vm5 = vcmp.lt.s32.totalorder %v683_v29, 2  ;;  %vm580_vm6 = vcmp.lt.s32.totalorder %v579_v27, 2  ;;  %v334_v43 = vpop.permute.xlu1 %333 }
 0x250   :  { %v1570_v4 = vpop.eup %1569  ;;  %vm889_vm14 = vweird.f32 %v1783_v54  ;;  %v907_v54 = vld [vmem:[#allocation2 + $0x68] sm:$0xff]  ;;  %v1670_v0 = vmov 4  }
 0x251   :  { %v1572_v58 = vpop.eup %1571  ;;  %v585_v17 = vxor.u32 2147483648, %v1570_v4  ;;  %vm893_vm7 = vcmp.eq.s32.totalorder %v891_v23, 0  ;;  %vm896_vm8 = vcmp.eq.s32.totalorder %v891_v23, 2  ;;  %vm789_vm9 = vcmp.eq.s32.totalorder %v787_v44, 0  ;;  %1550 = vset.pattern.permute.xlu1 %v1670_v0  ;;  %1551 = vset.pattern.permute.xlu0 %v1670_v0 }
 0x252   :  { %v1574_v20 = vpop.eup %1573  ;;  %v689_v47 = vxor.u32 2147483648, %v1572_v58  ;;  %vm792_vm10 = vcmp.eq.s32.totalorder %v787_v44, 2  ;;  %vm892_vm13 = vcmp.lt.s32.totalorder %v891_v23, 2  ;;  %vm788_vm2 = vcmp.lt.s32.totalorder %v787_v44, 2  ;;  %1049 = vperm.xlu1 %1550, %v1603_v56  }
 0x253   :  { %v1576_v61 = vpop.eup %1575  ;;  %v686_v19 = vxor.u32 2147483648, %v1574_v20  ;;  %v338_v13 = vpop.permute.xlu1 %337 }
 0x254   :  { %v1578_v12 = vpop.eup %1577  ;;  %v582_v31 = vxor.u32 2147483648, %v1576_v61  ;;  %v690_v36 = vsel %vm688_vm0, %v689_v47, %v1574_v20  ;;  %v586_v1 = vsel %vm584_vm4, %v585_v17, %v1576_v61 }
 0x255   :  { %v1580_v35 = vpop.eup %1579  ;;  %v687_v24 = vsel %vm685_vm15, %v1572_v58, %v686_v19  ;;  %v793_v51 = vxor.u32 2147483648, %v1578_v12  ;;  %vm785_vm15 = vweird.f32 %v1780_v49  ;;  %v909_v49 = vld [vmem:[#allocation2 + $0x78] sm:$0xff] }
 0x256   :  { %v1582_v28 = vpop.eup %1581  ;;  %v583_v60 = vsel %vm581_vm3, %v1570_v4, %v582_v31  ;;  %v897_v46 = vxor.u32 2147483648, %v1580_v35  ;;  %v691_v39 = vsel %vm684_vm5, %v687_v24, %v690_v36  ;;  %v1604_v4 = vld [vmem:[%s2239_s3 + $0x8] sm:$0xff]  ;;  %1057 = vperm.xlu1 %1550, %v1605_v57   ;;  %v1606_v58 = vld [vmem:[%s2239_s3 + $0x18] sm:$0xff] }
 0x257   :  { %v1584_v21 = vpop.eup %1583  ;;  %v894_v48 = vxor.u32 2147483648, %v1582_v28  ;;  %v587_v26 = vsel %vm580_vm6, %v583_v60, %v586_v1  ;;  %v692_v63 = vsel %vm681_vm11, nan, %v691_v39  ;;  %1053 = vperm.xlu0 %1551, %v1604_v4   ;;  %vm1672_vm6 = vmmov 0  }
 0x258   :  { %v790_v34 = vxor.u32 2147483648, %v1584_v21  ;;  %v898_v52 = vsel %vm896_vm8, %v897_v46, %v1582_v28  ;;  %v794_v59 = vsel %vm792_vm10, %v793_v51, %v1584_v21  ;;  %v588_v37 = vsel %vm577_vm12, nan, %v587_v26  ;;  %v1045_v26 = vld [vmem:[#allocation2 + $0x88] sm:$0xff] }
 0x259   :  { %v895_v62 = vsel %vm893_vm7, %v1580_v35, %v894_v48 }
 0x25a   :  { %v791_v7 = vsel %vm789_vm9, %v1578_v12, %v790_v34  ;;  %v899_v41 = vsel %vm892_vm13, %v895_v62, %v898_v52  ;;  %1061 = vperm.xlu1 %1550, %v1606_v58   ;;  %v1046_v62 = vld [vmem:[#allocation2 + $0x90] sm:$0xff]  ;;  %v1047_v52 = vld [vmem:[#allocation2 + $0x98] sm:$0xff] }
 0x25b   :  { %v795_v25 = vsel %vm788_vm2, %v791_v7, %v794_v59  ;;  %v900_v10 = vsel %vm889_vm14, nan, %v899_v41  ;;  %v1183_v7 = vld [vmem:[%s2239_s3] sm:$0x1]  ;;  %v1674_v59 = vmov 5   ;;  %s1675_s3 = smov [#allocation5]  }
 0x25c   :  { %v796_v30 = vsel %vm785_vm15, nan, %v795_v25  ;;  %1552 = vset.pattern.permute.xlu0 %v1674_v59  ;;  %s1274_s24 = sshll.u32 %s1675_s3, 4  ;;  %s1275_s24 = int_to_ptr.vmem [resolvable:$true] %s1274_s24 }
 0x25d   :  { %1186 = vperm.xlu0 %1552, %v1183_v7   ;;  %s1629_s25 = scalar_lea.vmem %s1275_s24, 16  ;;  %s1633_s26 = scalar_lea.vmem %s1275_s24, 32 }
 0x25e   :  { %p1630_p8 = scmp.ne.s32.totalorder %s1275_s24, %s1629_s25  ;;  %p1634_p9 = scmp.lt.s32.totalorder %s1275_s24, %s1275_s24 }
 0x25f   :  { %p1635_p10 = scmp.lt.s32.totalorder %s1633_s26, %s1629_s25 }
 0x261   :  { %p1636_p11 = por %p1635_p10, %p1634_p9 }
 0x263   :  { %p1637_p12 = pnand %p1636_p11, %p1630_p8 }
 0x29e   :  { %v912_v2 = vpop.permute.xlu0 %911  ;;  %v916_v20 = vpop.permute.xlu1 %915 }
 0x2a2   :  { %v924_v12 = vpop.permute.xlu0 %923  ;;  %v920_v35 = vpop.permute.xlu1 %919 }
 0x2cf   :  { %v1414_v9 = vpop.f32.mrb[4].mxu0 }
 0x2d0   :  { %v424_v5 = vadd.f32 %v1414_v9, %v330_v15  ;;  %v418_v8 = vpop.f32.mrb[5].mxu0 }
 0x2d1   :  { %v419_v22 = vadd.f32 %v418_v8, %v326_v16  ;;  %v1673_v8 = vmov 0.0  }
 0x2d2   :  { %v902_v11 = vadd.f32 %v692_v63, %v424_v5  ;;  %v1671_v5 = vmov 0.0|0.0   ;;  %v1050_v63 = vpop.permute.xlu1 %1049 }
 0x2d3   :  { %v901_v33 = vadd.f32 %v588_v37, %v419_v22  ;;  %v1417_v45 = vpop.f32.mrb[6].mxu0 }
 0x2d4   :  { %v434_v42 = vadd.f32 %v1417_v45, %v338_v13  ;;  %v428_v6 = vpop.f32.mrb[7].mxu0 }
 0x2d5   :  { %v429_v53 = vadd.f32 %v428_v6, %v334_v43  ;;  %v1477_v40 = vpack.c.bf16 %v902_v11, %v901_v33 }
 0x2d6   :  { %v904_v18 = vadd.f32 %v900_v10, %v434_v42  ;;  %v1058_v22 = vpop.permute.xlu1 %1057  ;;  %v1054_v11 = vpop.permute.xlu0 %1053 }
 0x2d7   :  { %v903_v32 = vadd.f32 %v796_v30, %v429_v53  ;;  %1478 = vmatprep.subr.bf16.mxu1 %v1477_v40 }
 0x2d8   :  { %1480 = vmatpush3.bf16.msra.mxu1 %v1477_v40 }
 0x2d9   :  { %v1481_v55 = vpack.c.bf16 %v904_v18, %v903_v32 }
 0x2da   :  { %v1062_v25 = vpop.permute.xlu1 %1061 }
 0x2db   :  { %1482 = vmatprep.subr.bf16.mxu1 %v1481_v55 }
 0x2dc   :  { %1484 = vmatpush3.bf16.msra.mxu1 %v1481_v55 }
 0x2dd   :  { %1493 = vmatprep.subr.bf16.mxu1 %v1671_v5 }
 0x2df   :  { %1427 = vmatmul.mubr.msk.f32.vlgmr.msra.gmra.mrb[4].mxu1 %vm201_vm1, %v907_v54 }
 0x2e0   :  { %1429 = vmatprep.mubr.msk.f32.mxu1 %vm201_vm1, %v908_v38 }
 0x2e3   :  { %1430 = vmatmul.mubr.msk.f32.gmra.mrb[6].mxu1 %vm201_vm1, %v909_v49 }
 0x2e4   :  { %1454 = vmatprep.mubr.msk.f32.mxu1 %vm1672_vm6, %v1673_v8 }
 0x3b2   :  { %v1428_v29 = vpop.f32.mrb[4].mxu1 }
 0x3b3   :  { %v1010_v61 = vadd.f32 %v1428_v29, %v916_v20  ;;  %v1004_v27 = vpop.f32.mrb[5].mxu1 }
 0x3b4   :  { %v1005_v14 = vadd.f32 %v1004_v27, %v912_v2  ;;  %v1187_v27 = vpop.permute.xlu0 %1186 }
 0x3b5   :  { %v1029_v3 = vmul.f32 1.442695, %v1010_v61  ;;  %vm1024_vm0 = vcmp.gt.f32.partialorder %v1010_v61, 0.0 }
 0x3b6   :  { %v1027_v19 = vmul.f32 1.442695, %v1005_v14  ;;  %v1431_v47 = vpop.f32.mrb[6].mxu1  ;;  %vm1023_vm3 = vcmp.gt.f32.partialorder %v1005_v14, 0.0 }
 0x3b7   :  { %1585 = vpow2.f32 %v1029_v3  ;;  %v1020_v16 = vadd.f32 %v1431_v47, %v924_v12  ;;  %v1014_v31 = vpop.f32.mrb[7].mxu1 }
 0x3b8   :  { %1587 = vpow2.f32 %v1027_v19  ;;  %v1015_v17 = vadd.f32 %v1014_v31, %v920_v35 }
 0x3b9   :  { %v1033_v28 = vmul.f32 1.442695, %v1020_v16  ;;  %vm1026_vm4 = vcmp.gt.f32.partialorder %v1020_v16, 0.0 }
 0x3ba   :  { %v1031_v23 = vmul.f32 1.442695, %v1015_v17  ;;  %vm1025_vm5 = vcmp.gt.f32.partialorder %v1015_v17, 0.0 }
 0x3bb   :  { %1589 = vpow2.f32 %v1033_v28 }
 0x3bc   :  { %1591 = vpow2.f32 %v1031_v23 }
 0x3c1   :  { %v1586_v21 = vpop.eup %1585 }
 0x3c2   :  { %v1588_v44 = vpop.eup %1587  ;;  %v1324_v24 = vadd.f32 -1.0, %v1586_v21 }
 0x3c3   :  { %v1323_v36 = vadd.f32 -1.0, %v1588_v44 }
 0x3c4   :  { %v1040_v60 = vsel %vm1024_vm0, %v1010_v61, %v1324_v24  ;;  %v1182_v61 = vld [vmem:[#allocation2 + $0xa0] sm:$0x1] }
 0x3c5   :  { %v1590_v1 = vpop.eup %1589  ;;  %v1039_v48 = vsel %vm1023_vm3, %v1005_v14, %v1323_v36 }
 0x3c6   :  { %v1592_v46 = vpop.eup %1591  ;;  %v1326_v34 = vadd.f32 -1.0, %v1590_v1  ;;  %v1485_v51 = vpack.c.bf16 %v1040_v60, %v1039_v48 }
 0x3c7   :  { %v1325_v43 = vadd.f32 -1.0, %v1592_v46 }
 0x3c8   :  { %1486 = vmatprep.subr.bf16.mxu0 %v1485_v51  ;;  %v1042_v15 = vsel %vm1026_vm4, %v1020_v16, %v1326_v34 }
 0x3c9   :  { %1488 = vmatpush3.bf16.msra.mxu0 %v1485_v51  ;;  %v1041_v39 = vsel %vm1025_vm5, %v1015_v17, %v1325_v43 }
 0x3ca   :  { %v1489_v9 = vpack.c.bf16 %v1042_v15, %v1041_v39 }
 0x3cc   :  { %1490 = vmatprep.subr.bf16.mxu0 %v1489_v9 }
 0x3cd   :  { %1492 = vmatpush3.bf16.msra.mxu0 %v1489_v9 }
 0x3d0   :  { %1441 = vmatmul.mubr.msk.f32.vlgmr.msra.gmra.mrb[8].mxu0 %vm201_vm1, %v1045_v26 }
 0x3d1   :  { %1443 = vmatprep.mubr.msk.f32.mxu0 %vm201_vm1, %v1046_v62 }
 0x3d4   :  { %1444 = vmatmul.mubr.msk.f32.gmra.mrb[10].mxu0 %vm201_vm1, %v1047_v52 }
 0x4a3   :  { %v1442_v37 = vpop.f32.mrb[8].mxu0 }
 0x4a4   :  { %v1148_v41 = vadd.f32 %v1442_v37, %v1054_v11  ;;  %v1142_v13 = vpop.f32.mrb[9].mxu0 }
 0x4a5   :  { %v1143_v33 = vadd.f32 %v1142_v13, %v1050_v63 }
 0x4a6   :  { %v1167_v45 = vmul.f32 1.442695, %v1148_v41  ;;  %vm1162_vm7 = vcmp.gt.f32.partialorder %v1148_v41, 0.0 }
 0x4a7   :  { %v1165_v42 = vmul.f32 1.442695, %v1143_v33  ;;  %v1445_v6 = vpop.f32.mrb[10].mxu0  ;;  %vm1161_vm8 = vcmp.gt.f32.partialorder %v1143_v33, 0.0 }
 0x4a8   :  { %1593 = vpow2.f32 %v1167_v45  ;;  %v1158_v10 = vadd.f32 %v1445_v6, %v1062_v25  ;;  %v1152_v53 = vpop.f32.mrb[11].mxu0 }
 0x4a9   :  { %1595 = vpow2.f32 %v1165_v42  ;;  %v1153_v40 = vadd.f32 %v1152_v53, %v1058_v22 }
 0x4aa   :  { %v1171_v18 = vmul.f32 1.442695, %v1158_v10  ;;  %vm1164_vm9 = vcmp.gt.f32.partialorder %v1158_v10, 0.0 }
 0x4ab   :  { %v1169_v30 = vmul.f32 1.442695, %v1153_v40  ;;  %vm1163_vm10 = vcmp.gt.f32.partialorder %v1153_v40, 0.0 }
 0x4ac   :  { %1597 = vpow2.f32 %v1171_v18 }
 0x4ad   :  { %1599 = vpow2.f32 %v1169_v30 }
 0x4b2   :  { %v1594_v32 = vpop.eup %1593 }
 0x4b3   :  { %v1596_v55 = vpop.eup %1595  ;;  %v1332_v54 = vadd.f32 -1.0, %v1594_v32 }
 0x4b4   :  { %v1331_v38 = vadd.f32 -1.0, %v1596_v55 }
 0x4b5   :  { %v1178_v49 = vsel %vm1162_vm7, %v1148_v41, %v1332_v54 }
 0x4b6   :  { %v1598_v50 = vpop.eup %1597  ;;  %v1177_v0 = vsel %vm1161_vm8, %v1143_v33, %v1331_v38 }
 0x4b7   :  { %v1600_v56 = vpop.eup %1599  ;;  %v1494_v4 = vpack.c.bf16 %v1178_v49, %v1177_v0  ;;  %v1334_v57 = vadd.f32 -1.0, %v1598_v50 }
 0x4b8   :  { %v1333_v58 = vadd.f32 -1.0, %v1600_v56 }
 0x4b9   :  { %v1180_v2 = vsel %vm1164_vm9, %v1158_v10, %v1334_v57  ;;  %1495 = vmatpush3.bf16.msra.mxu1 %v1494_v4 }
 0x4ba   :  { %v1179_v20 = vsel %vm1163_vm10, %v1153_v40, %v1333_v58  ;;  %1496 = vmatprep.subr.bf16.mxu1 %v1671_v5 }
 0x4bb   :  { %v1497_v29 = vpack.c.bf16 %v1180_v2, %v1179_v20 }
 0x4bd   :  { %1498 = vmatpush3.bf16.msra.mxu1 %v1497_v29 }
 0x4c0   :  { %1455 = vmatmul.mubr.msk.f32.vlgmr.msra.gmra.mrb[8].mxu1 %vm201_vm1, %v1182_v61 }
 0x593   :  { %v1258_v14 = vpop.f32.mrb[8].mxu1 }
 0x594   :  { %v1259_v3 = vadd.f32 %v1258_v14, %v1187_v27  ;;  %v1456_v12 = vpop.f32.mrb[9].mxu1 }
 0x596   :  { %v1263_v19 = vmul.f32 1.442695, %v1259_v3  ;;  %vm1262_vm11 = vcmp.gt.f32.partialorder %v1259_v3, 0.0 }
 0x598   :  { %1601 = vpow2.f32 %v1263_v19 }
 0x5a2   :  { %v1602_v47 = vpop.eup %1601 }
 0x5a3   :  { %v1336_v35 = vadd.f32 -1.0, %v1602_v47 }
 0x5a5   :  { %v1266_v16 = vsel %vm1262_vm11, %v1259_v3, %v1336_v35 }
 0x5a6   :  { %1267 = vst [vmem:[#allocation5] sm:$0x1] %v1266_v16 }
 0x5a7   :  { %1640 = shalt.err (!%p1637_p12)
}
 0x5a8   :  { %s1641_s29 = scalar_lea.hbm %s2240_s4, 16 }
 0x5a9   :  { %p1642_p13 = scmp.ne.s32.totalorder %s2240_s4, %s1641_s29  ;;  %p1645_p0 = scmp.lt.u32.totalorder %s1641_s29, %s2240_s4 }
 0x5ab   :  { %p1647_p1 = pnand %p1645_p0, %p1642_p13 }
 0x5ad   :  { %1650 = shalt.err (!%p1647_p1)
}
 0x5ae   :  { %1277 = dma.vmem_to_hbm [thread:$0]  %s1275_s24, 16, %s2240_s4, [#allocation4]  }
 0x5af   :  { %1653 = dma.done.wait [#allocation4], 16  }
 0x5b0   :  { %1654 = vsyncadd [#allocation4], 4294967280 }
 0x5b1   :  { %1281 = vsyncpa [#allocation3], 1 }
 0x5b2   :  { %1282 = vsyncpa [#allocation4], 1 }

</bundles_post_ra>
